<compile_context>
chip_gen: v6e
topology: v6e:2x2x1
jax: 0.10.0
libtpu: 0.0.40
codegen_flags: <defaults>
</compile_context>

<pallas_src>
import math

import jax
import jax.numpy as jnp
from jax.experimental import pallas as pl
from jax.experimental.pallas import tpu as pltpu  # noqa: F401

EPS = 1e-5          # torch.nn.BatchNorm1d default eps
LANES = 128         # run the whole pipeline at 128 lanes


# ----------------------------- fused kernel ----------------------------------------


def progressive_kernel(x_ref, s1_ref, h1_ref, cc_ref, cc0_ref, w2_ref,
                       s2_ref, h2_ref, o_ref):
    """Fused forward of all Up blocks.

    x_ref  : (f*b, 128)       input rows (frame-major, batch-minor), zero-padded lanes
    s1/h1  : (n, f*b, 128)    folded bn1 affine per block
    cc     : (n, 128, 256)    [C | C@A]  with C = [I | W_up^T], A = kron(att, I3)
    cc0    : (n, 1, 256)      [c0 | c0@A] with c0 = [0 | b_up]
    w2     : (n, f*b, f*b)    kron(W_graph, I_batch)  (frame mixing for the whole batch)
    s2/h2  : (n, f*b, 128)    folded bn2 affine with the gL bias absorbed into h2
    """
    x = x_ref[...]
    n_blocks = cc_ref.shape[0]
    for k in range(n_blocks):                       # unrolled at trace time (n = 4)
        y = x * s1_ref[k] + h1_ref[k]               # bn1 (eval mode, folded affine)
        # One matmul produces both out0 (= Linear + cat) and the GCN "support".
        z = jnp.dot(y, cc_ref[k],
                    preferred_element_type=jnp.float32) + cc0_ref[k]
        out0 = z[:, :LANES]                         # lane-tile-aligned slices (views)
        s = z[:, LANES:]
        g = jnp.dot(w2_ref[k], s,                   # output = kron(Wg, I_b) @ support
                    preferred_element_type=jnp.float32)
        # bn2 (folded, bias absorbed) + relu + dropout(identity) + residual
        x = jnp.maximum(g * s2_ref[k] + h2_ref[k], 0.0) + out0
    o_ref[...] = x


def progressive_forward(x_fbd, fused, d_out):
    """x_fbd: (frame, batch, input_size) -> (frame, batch, d_out)."""
    f, b, d_in = x_fbd.shape
    fb = f * b

    # (f, b, d) -> (f*b, d) is a free row-major bitcast; pad lanes to 128 with zeros.
    x = x_fbd.reshape(fb, d_in).astype(jnp.float32)
    x = jnp.pad(x, ((0, 0), (0, LANES - d_in)))

    args = (x, fused["s1"], fused["h1"], fused["CC"], fused["cc0"],
            fused["W2"], fused["s2"], fused["h2"])

    n_blocks = int(fused["CC"].shape[0])
    flops = n_blocks * (2 * fb * LANES * (2 * LANES) + 2 * fb * fb * LANES
                        + 6 * fb * LANES)
    bytes_accessed = sum(int(a.size) * 4 for a in args) + fb * LANES * 4

    out = pl.pallas_call(
        progressive_kernel,
        out_shape=jax.ShapeDtypeStruct((fb, LANES), jnp.float32),
        cost_estimate=pl.CostEstimate(flops=flops, transcendentals=0,
                                      bytes_accessed=bytes_accessed),
    )(*args)

    return out[:, :d_out].reshape(f, b, d_out)


# --------------------- deterministic parameter construction ------------------------


def make_up_params(key, frame_num, d_in, node, adj):
    """Raw per-block parameters, mirroring Up.__init__ / GraphConvolution.reset_parameters."""
    d_out = node * 3
    k_lin, k_wg, k_q, k_bias = jax.random.split(key, 4)

    # nn.Linear(d_in, 3): xavier_normal_ weight, bias filled with 0.1
    std = math.sqrt(2.0 / (d_in + 3))
    w_up = jax.random.normal(k_lin, (3, d_in), jnp.float32) * std
    wupT = w_up.T                                            # (d_in, 3)
    bup = jnp.full((1, 3), 0.1, jnp.float32)

    # GraphConvolution(frame_num -> frame_num, node_n=d_out)
    stdv = 1.0 / math.sqrt(node)
    Wg = jax.random.uniform(k_wg, (frame_num, frame_num), jnp.float32, -stdv, stdv)
    Q = jax.random.uniform(k_q, (node, node), jnp.float32, 0.01, 0.24)
    att = adj + Q
    bg = jax.random.uniform(k_bias, (1, d_out), jnp.float32, -stdv, stdv)
    Abig = jnp.kron(att, jnp.eye(3, dtype=jnp.float32))      # (d_out, d_out)

    # BatchNorm1d (eval): weight=1, bias=0, running_mean=0, running_var=1.
    def bn(d):
        return (jnp.ones((frame_num, d), jnp.float32),
                jnp.zeros((frame_num, d), jnp.float32),
                jnp.zeros((frame_num, d), jnp.float32),
                jnp.ones((frame_num, d), jnp.float32))

    g1, b1, rm1, rv1 = bn(d_in)
    g2, b2, rm2, rv2 = bn(d_out)

    return dict(g1=g1, b1=b1, rm1=rm1, rv1=rv1, wupT=wupT, bup=bup,
                Abig=Abig, Wg=Wg, bg=bg, g2=g2, b2=b2, rm2=rm2, rv2=rv2)


def build_fused(params_list, frame_num, batch):
    """Fold + pad + stack all per-block constants for the fused kernel."""
    s1s, h1s, CCs, cc0s, W2s, s2s, h2s = [], [], [], [], [], [], []
    eye_b = jnp.eye(batch, dtype=jnp.float32)

    def rep_pad(a, d):
        # (frame, d) per-frame params -> per-row (frame*batch, 128): row r <-> frame r // batch
        a = jnp.repeat(a, batch, axis=0)
        return jnp.pad(a, ((0, 0), (0, LANES - d)))

    for p in params_list:
        d_in = p["wupT"].shape[0]
        d_out = p["Abig"].shape[0]

        # bn1 affine folded
        scale1 = p["g1"] * jax.lax.rsqrt(p["rv1"] + EPS)
        shift1 = p["b1"] - p["rm1"] * scale1
        s1s.append(rep_pad(scale1, d_in))
        h1s.append(rep_pad(shift1, d_in))

        # Linear + concat folded: out0 = y @ [I | W_up^T] + [0 | b_up]
        C = jnp.concatenate([jnp.eye(d_in, dtype=jnp.float32), p["wupT"]], axis=1)
        c0 = jnp.concatenate([jnp.zeros((1, d_in), jnp.float32), p["bup"]], axis=1)
        C = jnp.pad(C, ((0, LANES - d_in), (0, LANES - d_out)))          # (128, 128)
        c0 = jnp.pad(c0, ((0, 0), (0, LANES - d_out)))                   # (1, 128)

        # GraphConvolution feature mixing, fused with C into a single (128, 256) weight.
        A = jnp.pad(p["Abig"], ((0, LANES - d_out), (0, LANES - d_out)))  # (128, 128)
        CCs.append(jnp.concatenate([C, C @ A], axis=1))                   # (128, 256)
        cc0s.append(jnp.concatenate([c0, c0 @ A], axis=1))                # (1, 256)

        # GraphConvolution frame mixing for the whole (frame-major, batch-minor) slab.
        W2s.append(jnp.kron(p["Wg"], eye_b))                              # (f*b, f*b)

        # bn2 affine folded, gL bias absorbed into the shift
        scale2 = p["g2"] * jax.lax.rsqrt(p["rv2"] + EPS)
        shift2 = p["b2"] - p["rm2"] * scale2 + p["bg"] * scale2
        s2s.append(rep_pad(scale2, d_out))
        h2s.append(rep_pad(shift2, d_out))

    stack = lambda xs: jnp.stack(xs, axis=0)
    return dict(s1=stack(s1s), h1=stack(h1s), CC=stack(CCs), cc0=stack(cc0s),
                W2=stack(W2s), s2=stack(s2s), h2=stack(h2s))


# --------------------- pure-JAX reference (for verification) -----------------------


def up_ref(x_bfd, p):
    y = (x_bfd - p["rm1"]) * jax.lax.rsqrt(p["rv1"] + EPS) * p["g1"] + p["b1"]
    up = y @ p["wupT"] + p["bup"]
    out0 = jnp.concatenate([y, up], axis=-1)
    s = out0 @ p["Abig"]
    gout = jnp.einsum("gf,bfd->bgd", p["Wg"], s) + p["bg"]
    y2 = (gout - p["rm2"]) * jax.lax.rsqrt(p["rv2"] + EPS) * p["g2"] + p["b2"]
    return jnp.maximum(y2, 0.0) + out0


# ------------------------------------- main -----------------------------------------


if __name__ == "__main__":
    frame_num, batch, input_size = 8, 2, 18          # 18 = 6 joints * 3 -> 21 -> 24 -> 27 -> 30
    nodes = [7, 8, 9, 10]                            # mid_size from Progressive.__init__

    key = jax.random.PRNGKey(0)
    key, kx = jax.random.split(key)
    x = jax.random.normal(kx, (frame_num, batch, input_size), jnp.float32)

    params_list = []
    d_in = input_size
    for n in nodes:
        key, ka, kp = jax.random.split(key, 3)
        adj = jax.random.uniform(ka, (n, n), jnp.float32)    # synthetic adjacency
        adj = 0.5 * (adj + adj.T)
        params_list.append(make_up_params(kp, frame_num, d_in, n, adj))
        d_in = n * 3

    d_out_final = nodes[-1] * 3
    fused = build_fused(params_list, frame_num, batch)

    fwd = jax.jit(progressive_forward, static_argnums=(2,))
    out = jax.block_until_ready(fwd(x, fused, d_out_final))

    # verify against pure-JAX per-block reference
    ref = jnp.transpose(x, (1, 0, 2))                # (b, f, d)
    for p in params_list:
        ref = up_ref(ref, p)
    ref = jnp.transpose(ref, (1, 0, 2))              # (f, b, d_out)

    assert out.shape == (frame_num, batch, d_out_final), out.shape
    max_err = float(jnp.max(jnp.abs(out - ref)))
    assert max_err < 2e-3, f"mismatch vs reference: {max_err}"

    print("KERNEL_OK")
</pallas_src>

<mosaic_0001>
module attributes {stable_mosaic.version = 11 : i64} {
  func.func @progressive_kernel(%arg0: memref<16x128xf32, #tpu.memory_space<vmem>>, %arg1: memref<4x16x128xf32, #tpu.memory_space<vmem>>, %arg2: memref<4x16x128xf32, #tpu.memory_space<vmem>>, %arg3: memref<4x128x256xf32, #tpu.memory_space<vmem>>, %arg4: memref<4x1x256xf32, #tpu.memory_space<vmem>>, %arg5: memref<4x16x16xf32, #tpu.memory_space<vmem>>, %arg6: memref<4x16x128xf32, #tpu.memory_space<vmem>>, %arg7: memref<4x16x128xf32, #tpu.memory_space<vmem>>, %arg8: memref<16x128xf32, #tpu.memory_space<vmem>>) attributes {dimension_semantics = [], scalar_prefetch = 0 : i64, scratch_operands = 0 : i64, tpu.core_type = #tpu.core_type<tc>} {
    %c0 = arith.constant 0 : index
    %c0_0 = arith.constant 0 : index
    %0 = vector.load %arg0[%c0, %c0_0] : memref<16x128xf32, #tpu.memory_space<vmem>>, vector<16x128xf32>
    %c0_1 = arith.constant 0 : index
    %c0_2 = arith.constant 0 : index
    %c0_3 = arith.constant 0 : index
    %1 = vector.load %arg1[%c0_1, %c0_2, %c0_3] : memref<4x16x128xf32, #tpu.memory_space<vmem>>, vector<1x16x128xf32>
    %2 = vector.shape_cast %1 : vector<1x16x128xf32> to vector<16x128xf32>
    %3 = arith.mulf %0, %2 : vector<16x128xf32>
    %c0_4 = arith.constant 0 : index
    %c0_5 = arith.constant 0 : index
    %c0_6 = arith.constant 0 : index
    %4 = vector.load %arg2[%c0_4, %c0_5, %c0_6] : memref<4x16x128xf32, #tpu.memory_space<vmem>>, vector<1x16x128xf32>
    %5 = vector.shape_cast %4 : vector<1x16x128xf32> to vector<16x128xf32>
    %6 = arith.addf %3, %5 : vector<16x128xf32>
    %c0_7 = arith.constant 0 : index
    %c0_8 = arith.constant 0 : index
    %c0_9 = arith.constant 0 : index
    %7 = vector.load %arg3[%c0_7, %c0_8, %c0_9] : memref<4x128x256xf32, #tpu.memory_space<vmem>>, vector<1x128x256xf32>
    %8 = vector.shape_cast %7 : vector<1x128x256xf32> to vector<128x256xf32>
    %cst = arith.constant dense<0.000000e+00> : vector<16x256xf32>
    %9 = tpu.matmul %6, %8, %cst {dimension_numbers = #tpu.dot_dimension_numbers<[1], [0], [0], [1], [0, 0, 1, 1], [], []>} : vector<16x128xf32>, vector<128x256xf32>, vector<16x256xf32> -> vector<16x256xf32>
    %c0_10 = arith.constant 0 : index
    %c0_11 = arith.constant 0 : index
    %c0_12 = arith.constant 0 : index
    %10 = vector.load %arg4[%c0_10, %c0_11, %c0_12] : memref<4x1x256xf32, #tpu.memory_space<vmem>>, vector<1x1x256xf32>
    %11 = vector.shape_cast %10 : vector<1x1x256xf32> to vector<1x256xf32>
    %12 = vector.broadcast %11 : vector<1x256xf32> to vector<16x256xf32>
    %13 = arith.addf %9, %12 : vector<16x256xf32>
    %14 = vector.extract_strided_slice %13 {offsets = [0, 0], sizes = [16, 128], strides = [1, 1]} : vector<16x256xf32> to vector<16x128xf32>
    %15 = vector.extract_strided_slice %13 {offsets = [0, 128], sizes = [16, 128], strides = [1, 1]} : vector<16x256xf32> to vector<16x128xf32>
    %c0_13 = arith.constant 0 : index
    %c0_14 = arith.constant 0 : index
    %c0_15 = arith.constant 0 : index
    %16 = vector.load %arg5[%c0_13, %c0_14, %c0_15] : memref<4x16x16xf32, #tpu.memory_space<vmem>>, vector<1x16x16xf32>
    %17 = vector.shape_cast %16 : vector<1x16x16xf32> to vector<16x16xf32>
    %cst_16 = arith.constant dense<0.000000e+00> : vector<16x128xf32>
    %18 = tpu.matmul %17, %15, %cst_16 {dimension_numbers = #tpu.dot_dimension_numbers<[1], [0], [0], [1], [0, 0, 1, 1], [], []>} : vector<16x16xf32>, vector<16x128xf32>, vector<16x128xf32> -> vector<16x128xf32>
    %c0_17 = arith.constant 0 : index
    %c0_18 = arith.constant 0 : index
    %c0_19 = arith.constant 0 : index
    %19 = vector.load %arg6[%c0_17, %c0_18, %c0_19] : memref<4x16x128xf32, #tpu.memory_space<vmem>>, vector<1x16x128xf32>
    %20 = vector.shape_cast %19 : vector<1x16x128xf32> to vector<16x128xf32>
    %21 = arith.mulf %18, %20 : vector<16x128xf32>
    %c0_20 = arith.constant 0 : index
    %c0_21 = arith.constant 0 : index
    %c0_22 = arith.constant 0 : index
    %22 = vector.load %arg7[%c0_20, %c0_21, %c0_22] : memref<4x16x128xf32, #tpu.memory_space<vmem>>, vector<1x16x128xf32>
    %23 = vector.shape_cast %22 : vector<1x16x128xf32> to vector<16x128xf32>
    %24 = arith.addf %21, %23 : vector<16x128xf32>
    %cst_23 = arith.constant 0.000000e+00 : f32
    %25 = vector.broadcast %cst_23 : f32 to vector<16x128xf32>
    %26 = arith.maximumf %24, %25 : vector<16x128xf32>
    %27 = arith.addf %26, %14 : vector<16x128xf32>
    %c1 = arith.constant 1 : index
    %c0_24 = arith.constant 0 : index
    %c0_25 = arith.constant 0 : index
    %28 = vector.load %arg1[%c1, %c0_24, %c0_25] : memref<4x16x128xf32, #tpu.memory_space<vmem>>, vector<1x16x128xf32>
    %29 = vector.shape_cast %28 : vector<1x16x128xf32> to vector<16x128xf32>
    %30 = arith.mulf %27, %29 : vector<16x128xf32>
    %c1_26 = arith.constant 1 : index
    %c0_27 = arith.constant 0 : index
    %c0_28 = arith.constant 0 : index
    %31 = vector.load %arg2[%c1_26, %c0_27, %c0_28] : memref<4x16x128xf32, #tpu.memory_space<vmem>>, vector<1x16x128xf32>
    %32 = vector.shape_cast %31 : vector<1x16x128xf32> to vector<16x128xf32>
    %33 = arith.addf %30, %32 : vector<16x128xf32>
    %c1_29 = arith.constant 1 : index
    %c0_30 = arith.constant 0 : index
    %c0_31 = arith.constant 0 : index
    %34 = vector.load %arg3[%c1_29, %c0_30, %c0_31] : memref<4x128x256xf32, #tpu.memory_space<vmem>>, vector<1x128x256xf32>
    %35 = vector.shape_cast %34 : vector<1x128x256xf32> to vector<128x256xf32>
    %cst_32 = arith.constant dense<0.000000e+00> : vector<16x256xf32>
    %36 = tpu.matmul %33, %35, %cst_32 {dimension_numbers = #tpu.dot_dimension_numbers<[1], [0], [0], [1], [0, 0, 1, 1], [], []>} : vector<16x128xf32>, vector<128x256xf32>, vector<16x256xf32> -> vector<16x256xf32>
    %c1_33 = arith.constant 1 : index
    %c0_34 = arith.constant 0 : index
    %c0_35 = arith.constant 0 : index
    %37 = vector.load %arg4[%c1_33, %c0_34, %c0_35] : memref<4x1x256xf32, #tpu.memory_space<vmem>>, vector<1x1x256xf32>
    %38 = vector.shape_cast %37 : vector<1x1x256xf32> to vector<1x256xf32>
    %39 = vector.broadcast %38 : vector<1x256xf32> to vector<16x256xf32>
    %40 = arith.addf %36, %39 : vector<16x256xf32>
    %41 = vector.extract_strided_slice %40 {offsets = [0, 0], sizes = [16, 128], strides = [1, 1]} : vector<16x256xf32> to vector<16x128xf32>
    %42 = vector.extract_strided_slice %40 {offsets = [0, 128], sizes = [16, 128], strides = [1, 1]} : vector<16x256xf32> to vector<16x128xf32>
    %c1_36 = arith.constant 1 : index
    %c0_37 = arith.constant 0 : index
    %c0_38 = arith.constant 0 : index
    %43 = vector.load %arg5[%c1_36, %c0_37, %c0_38] : memref<4x16x16xf32, #tpu.memory_space<vmem>>, vector<1x16x16xf32>
    %44 = vector.shape_cast %43 : vector<1x16x16xf32> to vector<16x16xf32>
    %cst_39 = arith.constant dense<0.000000e+00> : vector<16x128xf32>
    %45 = tpu.matmul %44, %42, %cst_39 {dimension_numbers = #tpu.dot_dimension_numbers<[1], [0], [0], [1], [0, 0, 1, 1], [], []>} : vector<16x16xf32>, vector<16x128xf32>, vector<16x128xf32> -> vector<16x128xf32>
    %c1_40 = arith.constant 1 : index
    %c0_41 = arith.constant 0 : index
    %c0_42 = arith.constant 0 : index
    %46 = vector.load %arg6[%c1_40, %c0_41, %c0_42] : memref<4x16x128xf32, #tpu.memory_space<vmem>>, vector<1x16x128xf32>
    %47 = vector.shape_cast %46 : vector<1x16x128xf32> to vector<16x128xf32>
    %48 = arith.mulf %45, %47 : vector<16x128xf32>
    %c1_43 = arith.constant 1 : index
    %c0_44 = arith.constant 0 : index
    %c0_45 = arith.constant 0 : index
    %49 = vector.load %arg7[%c1_43, %c0_44, %c0_45] : memref<4x16x128xf32, #tpu.memory_space<vmem>>, vector<1x16x128xf32>
    %50 = vector.shape_cast %49 : vector<1x16x128xf32> to vector<16x128xf32>
    %51 = arith.addf %48, %50 : vector<16x128xf32>
    %cst_46 = arith.constant 0.000000e+00 : f32
    %52 = vector.broadcast %cst_46 : f32 to vector<16x128xf32>
    %53 = arith.maximumf %51, %52 : vector<16x128xf32>
    %54 = arith.addf %53, %41 : vector<16x128xf32>
    %c2 = arith.constant 2 : index
    %c0_47 = arith.constant 0 : index
    %c0_48 = arith.constant 0 : index
    %55 = vector.load %arg1[%c2, %c0_47, %c0_48] : memref<4x16x128xf32, #tpu.memory_space<vmem>>, vector<1x16x128xf32>
    %56 = vector.shape_cast %55 : vector<1x16x128xf32> to vector<16x128xf32>
    %57 = arith.mulf %54, %56 : vector<16x128xf32>
    %c2_49 = arith.constant 2 : index
    %c0_50 = arith.constant 0 : index
    %c0_51 = arith.constant 0 : index
    %58 = vector.load %arg2[%c2_49, %c0_50, %c0_51] : memref<4x16x128xf32, #tpu.memory_space<vmem>>, vector<1x16x128xf32>
    %59 = vector.shape_cast %58 : vector<1x16x128xf32> to vector<16x128xf32>
    %60 = arith.addf %57, %59 : vector<16x128xf32>
    %c2_52 = arith.constant 2 : index
    %c0_53 = arith.constant 0 : index
    %c0_54 = arith.constant 0 : index
    %61 = vector.load %arg3[%c2_52, %c0_53, %c0_54] : memref<4x128x256xf32, #tpu.memory_space<vmem>>, vector<1x128x256xf32>
    %62 = vector.shape_cast %61 : vector<1x128x256xf32> to vector<128x256xf32>
    %cst_55 = arith.constant dense<0.000000e+00> : vector<16x256xf32>
    %63 = tpu.matmul %60, %62, %cst_55 {dimension_numbers = #tpu.dot_dimension_numbers<[1], [0], [0], [1], [0, 0, 1, 1], [], []>} : vector<16x128xf32>, vector<128x256xf32>, vector<16x256xf32> -> vector<16x256xf32>
    %c2_56 = arith.constant 2 : index
    %c0_57 = arith.constant 0 : index
    %c0_58 = arith.constant 0 : index
    %64 = vector.load %arg4[%c2_56, %c0_57, %c0_58] : memref<4x1x256xf32, #tpu.memory_space<vmem>>, vector<1x1x256xf32>
    %65 = vector.shape_cast %64 : vector<1x1x256xf32> to vector<1x256xf32>
    %66 = vector.broadcast %65 : vector<1x256xf32> to vector<16x256xf32>
    %67 = arith.addf %63, %66 : vector<16x256xf32>
    %68 = vector.extract_strided_slice %67 {offsets = [0, 0], sizes = [16, 128], strides = [1, 1]} : vector<16x256xf32> to vector<16x128xf32>
    %69 = vector.extract_strided_slice %67 {offsets = [0, 128], sizes = [16, 128], strides = [1, 1]} : vector<16x256xf32> to vector<16x128xf32>
    %c2_59 = arith.constant 2 : index
    %c0_60 = arith.constant 0 : index
    %c0_61 = arith.constant 0 : index
    %70 = vector.load %arg5[%c2_59, %c0_60, %c0_61] : memref<4x16x16xf32, #tpu.memory_space<vmem>>, vector<1x16x16xf32>
    %71 = vector.shape_cast %70 : vector<1x16x16xf32> to vector<16x16xf32>
    %cst_62 = arith.constant dense<0.000000e+00> : vector<16x128xf32>
    %72 = tpu.matmul %71, %69, %cst_62 {dimension_numbers = #tpu.dot_dimension_numbers<[1], [0], [0], [1], [0, 0, 1, 1], [], []>} : vector<16x16xf32>, vector<16x128xf32>, vector<16x128xf32> -> vector<16x128xf32>
    %c2_63 = arith.constant 2 : index
    %c0_64 = arith.constant 0 : index
    %c0_65 = arith.constant 0 : index
    %73 = vector.load %arg6[%c2_63, %c0_64, %c0_65] : memref<4x16x128xf32, #tpu.memory_space<vmem>>, vector<1x16x128xf32>
    %74 = vector.shape_cast %73 : vector<1x16x128xf32> to vector<16x128xf32>
    %75 = arith.mulf %72, %74 : vector<16x128xf32>
    %c2_66 = arith.constant 2 : index
    %c0_67 = arith.constant 0 : index
    %c0_68 = arith.constant 0 : index
    %76 = vector.load %arg7[%c2_66, %c0_67, %c0_68] : memref<4x16x128xf32, #tpu.memory_space<vmem>>, vector<1x16x128xf32>
    %77 = vector.shape_cast %76 : vector<1x16x128xf32> to vector<16x128xf32>
    %78 = arith.addf %75, %77 : vector<16x128xf32>
    %cst_69 = arith.constant 0.000000e+00 : f32
    %79 = vector.broadcast %cst_69 : f32 to vector<16x128xf32>
    %80 = arith.maximumf %78, %79 : vector<16x128xf32>
    %81 = arith.addf %80, %68 : vector<16x128xf32>
    %c3 = arith.constant 3 : index
    %c0_70 = arith.constant 0 : index
    %c0_71 = arith.constant 0 : index
    %82 = vector.load %arg1[%c3, %c0_70, %c0_71] : memref<4x16x128xf32, #tpu.memory_space<vmem>>, vector<1x16x128xf32>
    %83 = vector.shape_cast %82 : vector<1x16x128xf32> to vector<16x128xf32>
    %84 = arith.mulf %81, %83 : vector<16x128xf32>
    %c3_72 = arith.constant 3 : index
    %c0_73 = arith.constant 0 : index
    %c0_74 = arith.constant 0 : index
    %85 = vector.load %arg2[%c3_72, %c0_73, %c0_74] : memref<4x16x128xf32, #tpu.memory_space<vmem>>, vector<1x16x128xf32>
    %86 = vector.shape_cast %85 : vector<1x16x128xf32> to vector<16x128xf32>
    %87 = arith.addf %84, %86 : vector<16x128xf32>
    %c3_75 = arith.constant 3 : index
    %c0_76 = arith.constant 0 : index
    %c0_77 = arith.constant 0 : index
    %88 = vector.load %arg3[%c3_75, %c0_76, %c0_77] : memref<4x128x256xf32, #tpu.memory_space<vmem>>, vector<1x128x256xf32>
    %89 = vector.shape_cast %88 : vector<1x128x256xf32> to vector<128x256xf32>
    %cst_78 = arith.constant dense<0.000000e+00> : vector<16x256xf32>
    %90 = tpu.matmul %87, %89, %cst_78 {dimension_numbers = #tpu.dot_dimension_numbers<[1], [0], [0], [1], [0, 0, 1, 1], [], []>} : vector<16x128xf32>, vector<128x256xf32>, vector<16x256xf32> -> vector<16x256xf32>
    %c3_79 = arith.constant 3 : index
    %c0_80 = arith.constant 0 : index
    %c0_81 = arith.constant 0 : index
    %91 = vector.load %arg4[%c3_79, %c0_80, %c0_81] : memref<4x1x256xf32, #tpu.memory_space<vmem>>, vector<1x1x256xf32>
    %92 = vector.shape_cast %91 : vector<1x1x256xf32> to vector<1x256xf32>
    %93 = vector.broadcast %92 : vector<1x256xf32> to vector<16x256xf32>
    %94 = arith.addf %90, %93 : vector<16x256xf32>
    %95 = vector.extract_strided_slice %94 {offsets = [0, 0], sizes = [16, 128], strides = [1, 1]} : vector<16x256xf32> to vector<16x128xf32>
    %96 = vector.extract_strided_slice %94 {offsets = [0, 128], sizes = [16, 128], strides = [1, 1]} : vector<16x256xf32> to vector<16x128xf32>
    %c3_82 = arith.constant 3 : index
    %c0_83 = arith.constant 0 : index
    %c0_84 = arith.constant 0 : index
    %97 = vector.load %arg5[%c3_82, %c0_83, %c0_84] : memref<4x16x16xf32, #tpu.memory_space<vmem>>, vector<1x16x16xf32>
    %98 = vector.shape_cast %97 : vector<1x16x16xf32> to vector<16x16xf32>
    %cst_85 = arith.constant dense<0.000000e+00> : vector<16x128xf32>
    %99 = tpu.matmul %98, %96, %cst_85 {dimension_numbers = #tpu.dot_dimension_numbers<[1], [0], [0], [1], [0, 0, 1, 1], [], []>} : vector<16x16xf32>, vector<16x128xf32>, vector<16x128xf32> -> vector<16x128xf32>
    %c3_86 = arith.constant 3 : index
    %c0_87 = arith.constant 0 : index
    %c0_88 = arith.constant 0 : index
    %100 = vector.load %arg6[%c3_86, %c0_87, %c0_88] : memref<4x16x128xf32, #tpu.memory_space<vmem>>, vector<1x16x128xf32>
    %101 = vector.shape_cast %100 : vector<1x16x128xf32> to vector<16x128xf32>
    %102 = arith.mulf %99, %101 : vector<16x128xf32>
    %c3_89 = arith.constant 3 : index
    %c0_90 = arith.constant 0 : index
    %c0_91 = arith.constant 0 : index
    %103 = vector.load %arg7[%c3_89, %c0_90, %c0_91] : memref<4x16x128xf32, #tpu.memory_space<vmem>>, vector<1x16x128xf32>
    %104 = vector.shape_cast %103 : vector<1x16x128xf32> to vector<16x128xf32>
    %105 = arith.addf %102, %104 : vector<16x128xf32>
    %cst_92 = arith.constant 0.000000e+00 : f32
    %106 = vector.broadcast %cst_92 : f32 to vector<16x128xf32>
    %107 = arith.maximumf %105, %106 : vector<16x128xf32>
    %108 = arith.addf %107, %95 : vector<16x128xf32>
    %c0_93 = arith.constant 0 : index
    %c0_94 = arith.constant 0 : index
    %109 = vector.load %arg8[%c0_93, %c0_94] : memref<16x128xf32, #tpu.memory_space<vmem>>, vector<16x128xf32>
    tpu.vector_store %arg8[%c0_93, %c0_94], %108 {strides = array<i32>} : memref<16x128xf32, #tpu.memory_space<vmem>>, vector<16x128xf32>,
    return
  }
}

</mosaic_0001>

<bundles_post_ra>
// kernel: progressive_forward.1
= control target key start
LH: loop header
LB: loop body
LE: loop exit
PB: predicated region body
PF: predicated region fallthrough
CT: control target
= control target key end

     0   :  { %13 = vsyncpa [#allocation3], 0  ;;  %s1437_s0 = inlined_call_operand.vmem [shape: f32[16,128], index: 0, kind: input, shape index: {}]   ;;  %s1438_s1 = inlined_call_operand.hbm [shape: f32[4,16,128], index: 1, kind: input, shape index: {}]   ;;  %s1439_s2 = inlined_call_operand.hbm [shape: f32[4,16,128], index: 2, kind: input, shape index: {}]   ;;  %s1440_s3 = inlined_call_operand.hbm [shape: f32[4,128,256], index: 3, kind: input, shape index: {}]   ;;  %s1441_s4 = inlined_call_operand.vmem [shape: f32[4,1,256], index: 4, kind: input, shape index: {}]   ;;  %s1442_s5 = inlined_call_operand.hbm [shape: f32[4,16,16], index: 5, kind: input, shape index: {}]   ;;  %s1443_s6 = inlined_call_operand.hbm [shape: f32[4,16,128], index: 6, kind: input, shape index: {}]   ;;  %s1444_s7 = inlined_call_operand.hbm [shape: f32[4,16,128], index: 7, kind: input, shape index: {}]   ;;  %s1445_s8 = inlined_call_operand.hbm [shape: f32[16,128], index: 8, kind: output, shape index: {}]  }
   0x1   :  { %14 = vsyncpa [#allocation6], 0 }
   0x2   :  { %15 = vsyncpa [#allocation9], 0 }
   0x3   :  { %16 = vsyncpa [#allocation12], 0 }
   0x4   :  { %17 = vsyncpa [#allocation4], 0  ;;  %s1271_s27 = smov [#allocation5]   ;;  %s1272_s29 = smov [#allocation8]  }
   0x5   :  { %s37_s28 = sshll.u32 %s1271_s27, 4  ;;  %s63_s30 = sshll.u32 %s1272_s29, 4  ;;  %s38_s28 = int_to_ptr.vmem [resolvable:$true] %s37_s28  ;;  %s64_s30 = int_to_ptr.vmem [resolvable:$true] %s63_s30 }
   0x6   :  { %s1129_s9 = scalar_lea.vmem %s38_s28, 1024  ;;  %p1134_p1 = scmp.lt.s32.totalorder %s38_s28, %s38_s28 }
   0x7   :  { %p1130_p0 = scmp.ne.s32.totalorder %s38_s28, %s1129_s9  ;;  %p1135_p2 = scmp.lt.s32.totalorder %s1129_s9, %s1129_s9 }
   0x9   :  { %p1136_p3 = por %p1135_p2, %p1134_p1 }
   0xb   :  { %p1137_p4 = pnand %p1136_p3, %p1130_p0 }
   0xd   :  { %1140 = shalt.err (!%p1137_p4)
}
   0xe   :  { %s1273_s10 = smov 128   ;;  %s1274_s11 = smov 8  }
   0xf   :  { %43 = dma.hbm_to_vmem [thread:$0]  %s1439_s2, 1024, %s38_s28, [#allocation6], %s1273_s10, %s1273_s10, %s1274_s11  }
  0x10   :  { %s1149_s14 = scalar_lea.vmem %s64_s30, 1024  ;;  %p1154_p6 = scmp.lt.s32.totalorder %s64_s30, %s64_s30 }
  0x11   :  { %p1150_p5 = scmp.ne.s32.totalorder %s64_s30, %s1149_s14  ;;  %p1155_p7 = scmp.lt.s32.totalorder %s1149_s14, %s1149_s14 }
  0x13   :  { %p1156_p8 = por %p1155_p7, %p1154_p6 }
  0x15   :  { %p1157_p9 = pnand %p1156_p8, %p1150_p5 }
  0x17   :  { %1160 = shalt.err (!%p1157_p9)
}
  0x18   :  { %69 = dma.hbm_to_vmem [thread:$0]  %s1442_s5, 1024, %s64_s30, [#allocation9], %s1273_s10, %s1273_s10, %s1274_s11  }
  0x19   :  { %s1275_s17 = smov [#allocation2]   ;;  %s1276_s19 = smov [#allocation7]  }
  0x1a   :  { %s25_s18 = sshll.u32 %s1275_s17, 4  ;;  %s49_s20 = sshll.u32 %s1276_s19, 4  ;;  %s26_s18 = int_to_ptr.vmem [resolvable:$true] %s25_s18  ;;  %s50_s20 = int_to_ptr.vmem [resolvable:$true] %s49_s20 }
  0x1b   :  { %s1169_s2 = scalar_lea.vmem %s26_s18, 1024  ;;  %p1174_p11 = scmp.lt.s32.totalorder %s26_s18, %s26_s18 }
  0x1c   :  { %p1170_p10 = scmp.ne.s32.totalorder %s26_s18, %s1169_s2  ;;  %p1175_p12 = scmp.lt.s32.totalorder %s1169_s2, %s1169_s2 }
  0x1e   :  { %p1176_p13 = por %p1175_p12, %p1174_p11 }
  0x20   :  { %p1177_p0 = pnand %p1176_p13, %p1170_p10 }
  0x22   :  { %1180 = shalt.err (!%p1177_p0)
}
  0x23   :  { %31 = dma.hbm_to_vmem [thread:$0]  %s1438_s1, 1024, %s26_s18, [#allocation3], %s1273_s10, %s1273_s10, %s1274_s11  }
  0x24   :  { %s1189_s5 = scalar_lea.vmem %s50_s20, 16384  ;;  %p1194_p2 = scmp.lt.s32.totalorder %s50_s20, %s50_s20 }
  0x25   :  { %p1190_p1 = scmp.ne.s32.totalorder %s50_s20, %s1189_s5  ;;  %p1195_p3 = scmp.lt.s32.totalorder %s1189_s5, %s1189_s5 }
  0x27   :  { %p1196_p4 = por %p1195_p3, %p1194_p2 }
  0x29   :  { %p1197_p5 = pnand %p1196_p4, %p1190_p1 }
  0x2b   :  { %1200 = shalt.err (!%p1197_p5)
}
  0x2c   :  { %s1277_s23 = smov 256   ;;  %s1278_s24 = smov 16  }
  0x2d   :  { %55 = dma.hbm_to_vmem [thread:$0]  %s1440_s3, 16384, %s50_s20, [#allocation6], %s1277_s23, %s1277_s23, %s1278_s24  }
  0x2e   :  { %s1279_s27 = smov [#allocation10]   ;;  %s1280_s29 = smov [#allocation11]  }
  0x2f   :  { %s75_s28 = sshll.u32 %s1279_s27, 4  ;;  %s87_s30 = sshll.u32 %s1280_s29, 4  ;;  %s76_s28 = int_to_ptr.vmem [resolvable:$true] %s75_s28  ;;  %s88_s30 = int_to_ptr.vmem [resolvable:$true] %s87_s30 }
  0x30   :  { %s1209_s1 = scalar_lea.vmem %s76_s28, 1024  ;;  %p1214_p7 = scmp.lt.s32.totalorder %s76_s28, %s76_s28 }
  0x31   :  { %p1210_p6 = scmp.ne.s32.totalorder %s76_s28, %s1209_s1  ;;  %p1215_p8 = scmp.lt.s32.totalorder %s1209_s1, %s1209_s1 }
  0x33   :  { %p1216_p9 = por %p1215_p8, %p1214_p7 }
  0x35   :  { %p1217_p10 = pnand %p1216_p9, %p1210_p6 }
  0x37   :  { %1220 = shalt.err (!%p1217_p10)
}
  0x38   :  { %81 = dma.hbm_to_vmem [thread:$0]  %s1443_s6, 1024, %s76_s28, [#allocation9], %s1273_s10, %s1273_s10, %s1274_s11  }
  0x39   :  { %s1229_s3 = scalar_lea.vmem %s88_s30, 1024  ;;  %p1234_p12 = scmp.lt.s32.totalorder %s88_s30, %s88_s30 }
  0x3a   :  { %p1230_p11 = scmp.ne.s32.totalorder %s88_s30, %s1229_s3  ;;  %p1235_p13 = scmp.lt.s32.totalorder %s1229_s3, %s1229_s3 }
  0x3c   :  { %p1236_p0 = por %p1235_p13, %p1234_p12 }
  0x3e   :  { %p1237_p1 = pnand %p1236_p0, %p1230_p11 }
  0x40   :  { %1240 = shalt.err (!%p1237_p1)
}
  0x41   :  { %93 = dma.hbm_to_vmem [thread:$0]  %s1444_s7, 1024, %s88_s30, [#allocation12], %s1273_s10, %s1273_s10, %s1274_s11  }
  0x42   :  { %1261 = dma.done.wait [#allocation3], 1024  }
  0x43   :  { %1262 = vsyncadd [#allocation3], 4294966272 }
  0x44   :  { %1263 = dma.done.wait [#allocation6], 17408  }
  0x45   :  { %1264 = vsyncadd [#allocation6], 4294949888 }
  0x46   :  { %1265 = dma.done.wait [#allocation9], 2048  }
  0x47   :  { %1266 = vsyncadd [#allocation9], 4294965248 }
  0x48   :  { %1267 = dma.done.wait [#allocation12], 1024  }
  0x49   :  { %1268 = vsyncadd [#allocation12], 4294966272  ;;  %v1281_v0 = vmov 0.0   ;;  %v153_v1 = vld [vmem:[#allocation7 + $0xf8] sm:$0xff]  ;;  %v152_v2 = vld [vmem:[#allocation7 + $0xf0] sm:$0xff]  ;;  %vm245_vm0 = vcmask 130048   ;;  %v156_v44 = vlaneseq }
  0x4a   :  { %230 = vmatprep.mubr.f32.mxu0 %v1281_v0  ;;  %v151_v3 = vld [vmem:[#allocation7 + $0xe8] sm:$0xff]  ;;  %166 = vmatprep.subr.mxu0 %v153_v1  ;;  %v150_v4 = vld [vmem:[#allocation7 + $0xe0] sm:$0xff]  ;;  %v149_v5 = vld [vmem:[#allocation7 + $0xd8] sm:$0xff] }
  0x4b   :  { %167 = vmatpush1.msra.mxu0 %v152_v2  ;;  %v148_v6 = vld [vmem:[#allocation7 + $0xd0] sm:$0xff]  ;;  %v147_v7 = vld [vmem:[#allocation7 + $0xc8] sm:$0xff]  ;;  %v146_v8 = vld [vmem:[#allocation7 + $0xc0] sm:$0xff]  ;;  %v1370_v45 = vshrl.u32 %v156_v44, 7 }
  0x4c   :  { %168 = vmatprep.subr.mxu0 %v151_v3  ;;  %v145_v9 = vld [vmem:[#allocation7 + $0xb8] sm:$0xff]  ;;  %v144_v10 = vld [vmem:[#allocation7 + $0xb0] sm:$0xff]  ;;  %v143_v11 = vld [vmem:[#allocation7 + $0xa8] sm:$0xff] }
  0x4d   :  { %169 = vmatpush1.msra.mxu0 %v150_v4  ;;  %v142_v12 = vld [vmem:[#allocation7 + $0xa0] sm:$0xff]  ;;  %v141_v13 = vld [vmem:[#allocation7 + $0x98] sm:$0xff]  ;;  %v140_v14 = vld [vmem:[#allocation7 + $0x90] sm:$0xff]  ;;  %v1375_v47 = vsub.s32 1, %v1370_v45 }
  0x4e   :  { %170 = vmatprep.subr.mxu0 %v149_v5  ;;  %v139_v15 = vld [vmem:[#allocation7 + $0x88] sm:$0xff]  ;;  %v138_v16 = vld [vmem:[#allocation7 + $0x80] sm:$0xff]  ;;  %v137_v17 = vld [vmem:[#allocation7 + $0x78] sm:$0xff] }
  0x4f   :  { %171 = vmatpush1.msra.mxu0 %v148_v6  ;;  %v136_v18 = vld [vmem:[#allocation7 + $0x70] sm:$0xff]  ;;  %v135_v19 = vld [vmem:[#allocation7 + $0x68] sm:$0xff]  ;;  %v134_v20 = vld [vmem:[#allocation7 + $0x60] sm:$0xff] }
  0x50   :  { %172 = vmatprep.subr.mxu0 %v147_v7  ;;  %v133_v21 = vld [vmem:[#allocation7 + $0x58] sm:$0xff]  ;;  %v132_v22 = vld [vmem:[#allocation7 + $0x50] sm:$0xff]  ;;  %v131_v23 = vld [vmem:[#allocation7 + $0x48] sm:$0xff] }
  0x51   :  { %173 = vmatpush1.msra.mxu0 %v146_v8  ;;  %v130_v24 = vld [vmem:[#allocation7 + $0x40] sm:$0xff]  ;;  %v129_v25 = vld [vmem:[#allocation7 + $0x38] sm:$0xff]  ;;  %v128_v28 = vld [vmem:[#allocation7 + $0x30] sm:$0xff] }
  0x52   :  { %174 = vmatprep.subr.mxu0 %v145_v9  ;;  %v112_v26 = vld [vmem:[%s1437_s0] sm:$0xff]  ;;  %v127_v29 = vld [vmem:[#allocation7 + $0x28] sm:$0xff]  ;;  %v125_v31 = vld [vmem:[#allocation7 + $0x18] sm:$0xff] }
  0x53   :  { %175 = vmatpush1.msra.mxu0 %v144_v10  ;;  %v114_v27 = vld [vmem:[#allocation2] sm:$0xff]  ;;  %v113_v34 = vld [vmem:[%s1437_s0 + $0x8] sm:$0xff]  ;;  %v124_v36 = vld [vmem:[#allocation7 + $0x10] sm:$0xff] }
  0x54   :  { %176 = vmatprep.subr.mxu0 %v143_v11  ;;  %v126_v30 = vld [vmem:[#allocation7 + $0x20] sm:$0xff]  ;;  %v116_v32 = vmul.f32 %v114_v27, %v112_v26  ;;  %v115_v35 = vld [vmem:[#allocation2 + $0x8] sm:$0xff]  ;;  %v381_v56 = vld [vmem:[#allocation7 + $0x1f8] sm:$0xff]  ;;  %v1389_v26 = vsub.s32 0, %v1370_v45 }
  0x55   :  { %177 = vmatpush1.msra.mxu0 %v142_v12  ;;  %v118_v33 = vld [vmem:[#allocation5] sm:$0xff]  ;;  %v123_v37 = vld [vmem:[#allocation7 + $0x8] sm:$0xff]  ;;  %v117_v40 = vmul.f32 %v115_v35, %v113_v34  ;;  %v380_v57 = vld [vmem:[#allocation7 + $0x1f0] sm:$0xff] }
  0x56   :  { %178 = vmatprep.subr.mxu0 %v141_v13  ;;  %v122_v38 = vld [vmem:[#allocation7] sm:$0xff]  ;;  %v120_v39 = vadd.f32 %v118_v33, %v116_v32  ;;  %v119_v41 = vld [vmem:[#allocation5 + $0x8] sm:$0xff]  ;;  %v377_v60 = vld [vmem:[#allocation7 + $0x1d8] sm:$0xff] }
  0x57   :  { %179 = vmatpush1.msra.mxu0 %v140_v14  ;;  %v121_v42 = vadd.f32 %v119_v41, %v117_v40  ;;  %v243_v43 = vld [vmem:[#allocation8] sm:$0xff]  ;;  %v244_v55 = vld [vmem:[#allocation8 + $0x8] sm:$0xff]  ;;  %v376_v61 = vld [vmem:[#allocation7 + $0x1d0] sm:$0xff] }
  0x58   :  { %180 = vmatprep.subr.mxu0 %v139_v15  ;;  %1085 = vmatprep.mubr.msk.f32.mxu1 %vm245_vm0, %v243_v43  ;;  %v1380_v49 = vld [vmem:[%s1441_s4] sm:$0x3]  ;;  %v379_v58 = vld [vmem:[#allocation7 + $0x1e8] sm:$0xff]  ;;  %v373_v1 = vld [vmem:[#allocation7 + $0x1b8] sm:$0xff] }
  0x59   :  { %181 = vmatpush1.msra.mxu0 %v138_v16  ;;  %v163_v51 = vrot.slane %v1380_v49, %v1375_v47  ;;  %v378_v59 = vld [vmem:[#allocation7 + $0x1e0] sm:$0xff]  ;;  %v375_v62 = vld [vmem:[#allocation7 + $0x1c8] sm:$0xff]  ;;  %v372_v2 = vld [vmem:[#allocation7 + $0x1b0] sm:$0xff]  ;;  %v159_v33 = vrot.slane %v1380_v49, %v1389_v26 }
  0x5a   :  { %182 = vmatprep.subr.mxu0 %v137_v17  ;;  %v374_v63 = vld [vmem:[#allocation7 + $0x1c0] sm:$0xff]  ;;  %v371_v3 = vld [vmem:[#allocation7 + $0x1a8] sm:$0xff]  ;;  %v369_v5 = vld [vmem:[#allocation7 + $0x198] sm:$0xff] }
  0x5b   :  { %183 = vmatpush1.msra.mxu0 %v136_v18  ;;  %v370_v4 = vld [vmem:[#allocation7 + $0x1a0] sm:$0xff]  ;;  %v368_v6 = vld [vmem:[#allocation7 + $0x190] sm:$0xff]  ;;  %v367_v7 = vld [vmem:[#allocation7 + $0x188] sm:$0xff] }
  0x5c   :  { %184 = vmatprep.subr.mxu0 %v135_v19  ;;  %v366_v8 = vld [vmem:[#allocation7 + $0x180] sm:$0xff]  ;;  %v365_v9 = vld [vmem:[#allocation7 + $0x178] sm:$0xff]  ;;  %v364_v10 = vld [vmem:[#allocation7 + $0x170] sm:$0xff] }
  0x5d   :  { %185 = vmatpush1.msra.mxu0 %v134_v20  ;;  %v363_v11 = vld [vmem:[#allocation7 + $0x168] sm:$0xff]  ;;  %v362_v12 = vld [vmem:[#allocation7 + $0x160] sm:$0xff]  ;;  %v361_v13 = vld [vmem:[#allocation7 + $0x158] sm:$0xff] }
  0x5e   :  { %186 = vmatprep.subr.mxu0 %v133_v21  ;;  %v360_v14 = vld [vmem:[#allocation7 + $0x150] sm:$0xff]  ;;  %v359_v15 = vld [vmem:[#allocation7 + $0x148] sm:$0xff]  ;;  %v358_v16 = vld [vmem:[#allocation7 + $0x140] sm:$0xff] }
  0x5f   :  { %187 = vmatpush1.msra.mxu0 %v132_v22  ;;  %v357_v17 = vld [vmem:[#allocation7 + $0x138] sm:$0xff]  ;;  %v356_v18 = vld [vmem:[#allocation7 + $0x130] sm:$0xff]  ;;  %v355_v19 = vld [vmem:[#allocation7 + $0x128] sm:$0xff] }
  0x60   :  { %188 = vmatprep.subr.mxu0 %v131_v23  ;;  %v354_v20 = vld [vmem:[#allocation7 + $0x120] sm:$0xff]  ;;  %v353_v21 = vld [vmem:[#allocation7 + $0x118] sm:$0xff]  ;;  %v352_v22 = vld [vmem:[#allocation7 + $0x110] sm:$0xff] }
  0x61   :  { %189 = vmatpush1.msra.mxu0 %v130_v24  ;;  %v351_v23 = vld [vmem:[#allocation7 + $0x108] sm:$0xff]  ;;  %v350_v24 = vld [vmem:[#allocation7 + $0x100] sm:$0xff]  ;;  %v340_v41 = vld [vmem:[#allocation2 + $0x10] sm:$0xff] }
  0x62   :  { %190 = vmatprep.subr.mxu0 %v129_v25  ;;  %v328_v25 = vld [vmem:[#allocation10 + $0x8] sm:$0xff]  ;;  %v331_v32 = vld [vmem:[#allocation11] sm:$0xff]  ;;  %v345_v44 = vld [vmem:[#allocation5 + $0x10] sm:$0xff] }
  0x63   :  { %191 = vmatpush1.msra.mxu0 %v128_v28  ;;  %v332_v28 = vld [vmem:[#allocation11 + $0x8] sm:$0xff]  ;;  %v341_v45 = vld [vmem:[#allocation2 + $0x18] sm:$0xff] }
  0x64   :  { %192 = vmatprep.subr.mxu0 %v127_v29  ;;  %v327_v29 = vld [vmem:[#allocation10] sm:$0xff] }
  0x65   :  { %193 = vmatpush1.msra.mxu0 %v126_v30 }
  0x66   :  { %194 = vmatprep.subr.mxu0 %v125_v31 }
  0x67   :  { %195 = vmatpush1.msra.mxu0 %v124_v36 }
  0x68   :  { %196 = vmatprep.subr.mxu0 %v123_v37 }
  0x69   :  { %197 = vmatpush1.msra.mxu0 %v122_v38 }
  0x6a   :  { %231 = vmatmul.mubr.f32.vlgmr.msra.gmra.mxu0 %v120_v39 }
  0x6b   :  { %236 = vmatprep.mubr.f32.mxu0 %v1281_v0 }
  0x6e   :  { %237 = vmatmul.mubr.f32.gmra.mxu0 %v121_v42 }
 0x12a   :  { %v1372_v46 = vpop.f32.mrf.mxu0 }
 0x12b   :  { %v233_v38 = vadd.f32 %v1372_v46, %v159_v33  ;;  %v473_v46 = vld [vmem:[#allocation8 + $0x10] sm:$0xff] }
 0x12c   :  { %v234_v48 = vpop.f32.mrf.mxu0  ;;  %1092 = vmatprep.mubr.msk.f32.mxu0 %vm245_vm0, %v473_v46  ;;  %v572_v46 = vld [vmem:[#allocation2 + $0x28] sm:$0xff] }
 0x12d   :  { %v235_v54 = vadd.f32 %v234_v48, %v163_v51 }
 0x12e   :  { %v1382_v50 = vpop.f32.mrf.mxu0 }
 0x12f   :  { %v239_v39 = vadd.f32 %v1382_v50, %v159_v33  ;;  %v612_v50 = vld [vmem:[#allocation7 + $0x2f8] sm:$0xff] }
 0x130   :  { %v240_v52 = vpop.f32.mrf.mxu0 }
 0x131   :  { %v241_v53 = vadd.f32 %v240_v52, %v163_v51 }
 0x133   :  { %1081 = vmatprep.subr.mxu1 %v241_v53 }
 0x134   :  { %1082 = vmatpush3.msra.mxu1 %v241_v53  ;;  %v346_v53 = vld [vmem:[#allocation5 + $0x18] sm:$0xff] }
 0x135   :  { %1083 = vmatprep.subr.mxu1 %v235_v54 }
 0x136   :  { %1084 = vmatpush3.msra.mxu1 %v235_v54  ;;  %v611_v54 = vld [vmem:[#allocation7 + $0x2f0] sm:$0xff] }
 0x137   :  { %1086 = vmatmul.mubr.msk.f32.vlgmr.msra.gmra.mxu1 %vm245_vm0, %v244_v55  ;;  %395 = vmatprep.subr.mxu1 %v381_v56  ;;  %v610_v55 = vld [vmem:[#allocation7 + $0x2e8] sm:$0xff]  ;;  %v609_v56 = vld [vmem:[#allocation7 + $0x2e0] sm:$0xff] }
 0x138   :  { %396 = vmatpush1.msra.mxu1 %v380_v57  ;;  %459 = vmatprep.mubr.f32.mxu1 %v1281_v0  ;;  %v608_v57 = vld [vmem:[#allocation7 + $0x2d8] sm:$0xff] }
 0x139   :  { %397 = vmatprep.subr.mxu1 %v379_v58  ;;  %v607_v58 = vld [vmem:[#allocation7 + $0x2d0] sm:$0xff] }
 0x13a   :  { %398 = vmatpush1.msra.mxu1 %v378_v59  ;;  %v606_v59 = vld [vmem:[#allocation7 + $0x2c8] sm:$0xff] }
 0x13b   :  { %399 = vmatprep.subr.mxu1 %v377_v60  ;;  %v605_v60 = vld [vmem:[#allocation7 + $0x2c0] sm:$0xff] }
 0x13c   :  { %400 = vmatpush1.msra.mxu1 %v376_v61  ;;  %v604_v61 = vld [vmem:[#allocation7 + $0x2b8] sm:$0xff] }
 0x13d   :  { %401 = vmatprep.subr.mxu1 %v375_v62  ;;  %v603_v62 = vld [vmem:[#allocation7 + $0x2b0] sm:$0xff] }
 0x13e   :  { %402 = vmatpush1.msra.mxu1 %v374_v63  ;;  %v602_v63 = vld [vmem:[#allocation7 + $0x2a8] sm:$0xff] }
 0x13f   :  { %403 = vmatprep.subr.mxu1 %v373_v1  ;;  %v601_v1 = vld [vmem:[#allocation7 + $0x2a0] sm:$0xff] }
 0x140   :  { %404 = vmatpush1.msra.mxu1 %v372_v2  ;;  %v600_v2 = vld [vmem:[#allocation7 + $0x298] sm:$0xff] }
 0x141   :  { %405 = vmatprep.subr.mxu1 %v371_v3  ;;  %v599_v3 = vld [vmem:[#allocation7 + $0x290] sm:$0xff] }
 0x142   :  { %406 = vmatpush1.msra.mxu1 %v370_v4  ;;  %v598_v4 = vld [vmem:[#allocation7 + $0x288] sm:$0xff] }
 0x143   :  { %407 = vmatprep.subr.mxu1 %v369_v5  ;;  %v597_v5 = vld [vmem:[#allocation7 + $0x280] sm:$0xff] }
 0x144   :  { %408 = vmatpush1.msra.mxu1 %v368_v6  ;;  %v596_v6 = vld [vmem:[#allocation7 + $0x278] sm:$0xff] }
 0x145   :  { %409 = vmatprep.subr.mxu1 %v367_v7 }
 0x146   :  { %410 = vmatpush1.msra.mxu1 %v366_v8 }
 0x147   :  { %411 = vmatprep.subr.mxu1 %v365_v9  ;;  %v1056_v9 = vld [vmem:[%s1441_s4 + $0x2] sm:$0x3] }
 0x148   :  { %412 = vmatpush1.msra.mxu1 %v364_v10 }
 0x149   :  { %413 = vmatprep.subr.mxu1 %v363_v11  ;;  %v392_v11 = vrot.slane %v1056_v9, %v1375_v47 }
 0x14a   :  { %414 = vmatpush1.msra.mxu1 %v362_v12 }
 0x14b   :  { %415 = vmatprep.subr.mxu1 %v361_v13 }
 0x14c   :  { %416 = vmatpush1.msra.mxu1 %v360_v14 }
 0x14d   :  { %417 = vmatprep.subr.mxu1 %v359_v15  ;;  %v474_v15 = vld [vmem:[#allocation8 + $0x18] sm:$0xff] }
 0x14e   :  { %418 = vmatpush1.msra.mxu1 %v358_v16  ;;  %v595_v16 = vld [vmem:[#allocation7 + $0x270] sm:$0xff] }
 0x14f   :  { %419 = vmatprep.subr.mxu1 %v357_v17  ;;  %v594_v17 = vld [vmem:[#allocation7 + $0x268] sm:$0xff] }
 0x150   :  { %420 = vmatpush1.msra.mxu1 %v356_v18  ;;  %v593_v18 = vld [vmem:[#allocation7 + $0x260] sm:$0xff] }
 0x151   :  { %421 = vmatprep.subr.mxu1 %v355_v19  ;;  %v592_v19 = vld [vmem:[#allocation7 + $0x258] sm:$0xff] }
 0x152   :  { %422 = vmatpush1.msra.mxu1 %v354_v20  ;;  %v591_v20 = vld [vmem:[#allocation7 + $0x250] sm:$0xff] }
 0x153   :  { %423 = vmatprep.subr.mxu1 %v353_v21  ;;  %v590_v21 = vld [vmem:[#allocation7 + $0x248] sm:$0xff] }
 0x154   :  { %424 = vmatpush1.msra.mxu1 %v352_v22  ;;  %v589_v22 = vld [vmem:[#allocation7 + $0x240] sm:$0xff] }
 0x155   :  { %425 = vmatprep.subr.mxu1 %v351_v23  ;;  %v588_v23 = vld [vmem:[#allocation7 + $0x238] sm:$0xff] }
 0x156   :  { %426 = vmatpush1.msra.mxu1 %v350_v24  ;;  %v587_v24 = vld [vmem:[#allocation7 + $0x230] sm:$0xff] }
 0x157   :  { %626 = vmatprep.subr.mxu1 %v612_v50 }
 0x1f7   :  { %v1087_v27 = vpop.f32.mrf.mxu1 }
 0x1f8   :  { %v330_v30 = vmul.f32 %v1087_v27, %v328_v25  ;;  %v586_v25 = vld [vmem:[#allocation7 + $0x228] sm:$0xff]  ;;  %v585_v27 = vld [vmem:[#allocation7 + $0x220] sm:$0xff] }
 0x1f9   :  { %v318_v31 = vpop.f32.mrf.mxu1 }
 0x1fa   :  { %v334_v34 = vadd.f32 %v332_v28, %v330_v30  ;;  %v329_v35 = vmul.f32 %v327_v29, %v318_v31  ;;  %v584_v28 = vld [vmem:[#allocation7 + $0x218] sm:$0xff]  ;;  %v583_v29 = vld [vmem:[#allocation7 + $0x210] sm:$0xff]  ;;  %v582_v30 = vld [vmem:[#allocation7 + $0x208] sm:$0xff] }
 0x1fb   :  { %v581_v31 = vld [vmem:[#allocation7 + $0x200] sm:$0xff] }
 0x1fc   :  { %v336_v36 = vmax.f32 %v334_v34, 0.0  ;;  %v333_v37 = vadd.f32 %v331_v32, %v329_v35  ;;  %v558_v32 = vld [vmem:[#allocation10 + $0x18] sm:$0xff]  ;;  %v557_v35 = vld [vmem:[#allocation10 + $0x10] sm:$0xff] }
 0x1fd   :  { %v563_v34 = vld [vmem:[#allocation11 + $0x18] sm:$0xff] }
 0x1fe   :  { %v335_v40 = vmax.f32 %v333_v37, 0.0  ;;  %v338_v42 = vadd.f32 %v336_v36, %v239_v39  ;;  %v388_v39 = vrot.slane %v1056_v9, %v1389_v26  ;;  %v839_v9 = vld [vmem:[#allocation7 + $0x3d8] sm:$0xff] }
 0x200   :  { %v337_v43 = vadd.f32 %v335_v40, %v233_v38  ;;  %v343_v52 = vmul.f32 %v341_v45, %v338_v42  ;;  %v562_v38 = vld [vmem:[#allocation11 + $0x10] sm:$0xff] }
 0x202   :  { %v342_v48 = vmul.f32 %v340_v41, %v337_v43  ;;  %v348_v49 = vadd.f32 %v346_v53, %v343_v52 }
 0x204   :  { %v347_v51 = vadd.f32 %v345_v44, %v342_v48 }
 0x206   :  { %460 = vmatmul.mubr.f32.vlgmr.msra.gmra.mxu1 %v347_v51  ;;  %v571_v51 = vld [vmem:[#allocation2 + $0x20] sm:$0xff] }
 0x207   :  { %465 = vmatprep.mubr.f32.mxu1 %v1281_v0  ;;  %627 = vmatpush1.msra.mxu1 %v611_v54 }
 0x208   :  { %628 = vmatprep.subr.mxu1 %v610_v55 }
 0x209   :  { %629 = vmatpush1.msra.mxu1 %v609_v56  ;;  %v577_v56 = vld [vmem:[#allocation5 + $0x28] sm:$0xff] }
 0x20a   :  { %466 = vmatmul.mubr.f32.gmra.mxu1 %v348_v49  ;;  %630 = vmatprep.subr.mxu1 %v608_v57  ;;  %v576_v49 = vld [vmem:[#allocation5 + $0x20] sm:$0xff] }
 0x20b   :  { %690 = vmatprep.mubr.f32.mxu1 %v1281_v0  ;;  %631 = vmatpush1.msra.mxu1 %v607_v58  ;;  %v704_v58 = vld [vmem:[#allocation8 + $0x20] sm:$0xff] }
 0x20c   :  { %632 = vmatprep.subr.mxu1 %v606_v59 }
 0x20d   :  { %633 = vmatpush1.msra.mxu1 %v605_v60 }
 0x20e   :  { %634 = vmatprep.subr.mxu1 %v604_v61  ;;  %v1411_v61 = vld [vmem:[%s1441_s4 + $0x4] sm:$0x3] }
 0x20f   :  { %635 = vmatpush1.msra.mxu1 %v603_v62 }
 0x210   :  { %636 = vmatprep.subr.mxu1 %v602_v63  ;;  %v623_v63 = vrot.slane %v1411_v61, %v1375_v47 }
 0x211   :  { %637 = vmatpush1.msra.mxu1 %v601_v1 }
 0x212   :  { %638 = vmatprep.subr.mxu1 %v600_v2 }
 0x213   :  { %639 = vmatpush1.msra.mxu1 %v599_v3 }
 0x214   :  { %640 = vmatprep.subr.mxu1 %v598_v4  ;;  %v705_v4 = vld [vmem:[#allocation8 + $0x28] sm:$0xff] }
 0x215   :  { %641 = vmatpush1.msra.mxu1 %v597_v5  ;;  %v843_v5 = vld [vmem:[#allocation7 + $0x3f8] sm:$0xff] }
 0x216   :  { %642 = vmatprep.subr.mxu1 %v596_v6  ;;  %v842_v6 = vld [vmem:[#allocation7 + $0x3f0] sm:$0xff] }
 0x217   :  { %643 = vmatpush1.msra.mxu1 %v595_v16  ;;  %v832_v16 = vld [vmem:[#allocation7 + $0x3a0] sm:$0xff] }
 0x218   :  { %644 = vmatprep.subr.mxu1 %v594_v17  ;;  %v831_v17 = vld [vmem:[#allocation7 + $0x398] sm:$0xff] }
 0x219   :  { %645 = vmatpush1.msra.mxu1 %v593_v18  ;;  %v830_v18 = vld [vmem:[#allocation7 + $0x390] sm:$0xff] }
 0x21a   :  { %646 = vmatprep.subr.mxu1 %v592_v19  ;;  %v829_v19 = vld [vmem:[#allocation7 + $0x388] sm:$0xff] }
 0x21b   :  { %647 = vmatpush1.msra.mxu1 %v591_v20  ;;  %v828_v20 = vld [vmem:[#allocation7 + $0x380] sm:$0xff] }
 0x21c   :  { %648 = vmatprep.subr.mxu1 %v590_v21  ;;  %v827_v21 = vld [vmem:[#allocation7 + $0x378] sm:$0xff] }
 0x21d   :  { %649 = vmatpush1.msra.mxu1 %v589_v22  ;;  %v826_v22 = vld [vmem:[#allocation7 + $0x370] sm:$0xff] }
 0x21e   :  { %650 = vmatprep.subr.mxu1 %v588_v23  ;;  %v825_v23 = vld [vmem:[#allocation7 + $0x368] sm:$0xff] }
 0x21f   :  { %651 = vmatpush1.msra.mxu1 %v587_v24  ;;  %v824_v24 = vld [vmem:[#allocation7 + $0x360] sm:$0xff] }
 0x220   :  { %652 = vmatprep.subr.mxu1 %v586_v25  ;;  %v823_v25 = vld [vmem:[#allocation7 + $0x358] sm:$0xff] }
 0x221   :  { %653 = vmatpush1.msra.mxu1 %v585_v27  ;;  %v822_v27 = vld [vmem:[#allocation7 + $0x350] sm:$0xff] }
 0x222   :  { %654 = vmatprep.subr.mxu1 %v584_v28  ;;  %v821_v28 = vld [vmem:[#allocation7 + $0x348] sm:$0xff] }
 0x223   :  { %655 = vmatpush1.msra.mxu1 %v583_v29  ;;  %v820_v29 = vld [vmem:[#allocation7 + $0x340] sm:$0xff] }
 0x224   :  { %656 = vmatprep.subr.mxu1 %v582_v30  ;;  %v819_v30 = vld [vmem:[#allocation7 + $0x338] sm:$0xff] }
 0x225   :  { %657 = vmatpush1.msra.mxu1 %v581_v31  ;;  %v818_v31 = vld [vmem:[#allocation7 + $0x330] sm:$0xff] }
 0x2c6   :  { %v461_v7 = vpop.f32.mrf.mxu1 }
 0x2c7   :  { %v462_v44 = vadd.f32 %v461_v7, %v388_v39  ;;  %v841_v7 = vld [vmem:[#allocation7 + $0x3e8] sm:$0xff] }
 0x2c8   :  { %v463_v8 = vpop.f32.mrf.mxu1 }
 0x2c9   :  { %v464_v14 = vadd.f32 %v463_v8, %v392_v11  ;;  %v840_v8 = vld [vmem:[#allocation7 + $0x3e0] sm:$0xff] }
 0x2ca   :  { %v467_v10 = vpop.f32.mrf.mxu1 }
 0x2cb   :  { %v468_v45 = vadd.f32 %v467_v10, %v388_v39  ;;  %v838_v10 = vld [vmem:[#allocation7 + $0x3d0] sm:$0xff] }
 0x2cc   :  { %v469_v12 = vpop.f32.mrf.mxu1 }
 0x2cd   :  { %v470_v13 = vadd.f32 %v469_v12, %v392_v11  ;;  %v837_v11 = vld [vmem:[#allocation7 + $0x3c8] sm:$0xff]  ;;  %v836_v12 = vld [vmem:[#allocation7 + $0x3c0] sm:$0xff] }
 0x2cf   :  { %1088 = vmatprep.subr.mxu0 %v470_v13 }
 0x2d0   :  { %1089 = vmatpush3.msra.mxu0 %v470_v13  ;;  %v835_v13 = vld [vmem:[#allocation7 + $0x3b8] sm:$0xff] }
 0x2d1   :  { %1090 = vmatprep.subr.mxu0 %v464_v14 }
 0x2d2   :  { %1091 = vmatpush3.msra.mxu0 %v464_v14  ;;  %v834_v14 = vld [vmem:[#allocation7 + $0x3b0] sm:$0xff] }
 0x2d3   :  { %1093 = vmatmul.mubr.msk.f32.vlgmr.msra.gmra.mxu0 %vm245_vm0, %v474_v15  ;;  %v833_v15 = vld [vmem:[#allocation7 + $0x3a8] sm:$0xff] }
 0x2d4   :  { %1099 = vmatprep.mubr.msk.f32.mxu0 %vm245_vm0, %v704_v58  ;;  %v803_v58 = vld [vmem:[#allocation2 + $0x38] sm:$0xff] }
 0x393   :  { %v1094_v33 = vpop.f32.mrf.mxu0 }
 0x394   :  { %v560_v36 = vmul.f32 %v1094_v33, %v558_v32  ;;  %v817_v32 = vld [vmem:[#allocation7 + $0x328] sm:$0xff]  ;;  %v816_v33 = vld [vmem:[#allocation7 + $0x320] sm:$0xff] }
 0x395   :  { %v547_v37 = vpop.f32.mrf.mxu0 }
 0x396   :  { %v565_v40 = vadd.f32 %v563_v34, %v560_v36  ;;  %v559_v41 = vmul.f32 %v557_v35, %v547_v37  ;;  %v815_v34 = vld [vmem:[#allocation7 + $0x318] sm:$0xff]  ;;  %v814_v35 = vld [vmem:[#allocation7 + $0x310] sm:$0xff]  ;;  %v813_v36 = vld [vmem:[#allocation7 + $0x308] sm:$0xff] }
 0x397   :  { %v812_v37 = vld [vmem:[#allocation7 + $0x300] sm:$0xff] }
 0x398   :  { %v567_v42 = vmax.f32 %v565_v40, 0.0  ;;  %v564_v43 = vadd.f32 %v562_v38, %v559_v41  ;;  %v789_v38 = vld [vmem:[#allocation10 + $0x28] sm:$0xff]  ;;  %v788_v41 = vld [vmem:[#allocation10 + $0x20] sm:$0xff] }
 0x399   :  { %v794_v40 = vld [vmem:[#allocation11 + $0x28] sm:$0xff] }
 0x39a   :  { %v566_v48 = vmax.f32 %v564_v43, 0.0  ;;  %v569_v52 = vadd.f32 %v567_v42, %v468_v45  ;;  %v619_v45 = vrot.slane %v1411_v61, %v1389_v26 }
 0x39c   :  { %v568_v53 = vadd.f32 %v566_v48, %v462_v44  ;;  %v574_v55 = vmul.f32 %v572_v46, %v569_v52  ;;  %v793_v44 = vld [vmem:[#allocation11 + $0x20] sm:$0xff] }
 0x39e   :  { %v573_v50 = vmul.f32 %v571_v51, %v568_v53  ;;  %v579_v57 = vadd.f32 %v577_v56, %v574_v55 }
 0x3a0   :  { %v578_v54 = vadd.f32 %v576_v49, %v573_v50 }
 0x3a2   :  { %691 = vmatmul.mubr.f32.vlgmr.msra.gmra.mxu1 %v578_v54  ;;  %v802_v54 = vld [vmem:[#allocation2 + $0x30] sm:$0xff] }
 0x3a3   :  { %696 = vmatprep.mubr.f32.mxu1 %v1281_v0 }
 0x3a6   :  { %697 = vmatmul.mubr.f32.gmra.mxu1 %v579_v57  ;;  %v807_v57 = vld [vmem:[#allocation5 + $0x30] sm:$0xff] }
 0x462   :  { %v1406_v59 = vpop.f32.mrf.mxu1 }
 0x463   :  { %v693_v49 = vadd.f32 %v1406_v59, %v619_v45 }
 0x464   :  { %v694_v60 = vpop.f32.mrf.mxu1 }
 0x465   :  { %v695_v3 = vadd.f32 %v694_v60, %v623_v63 }
 0x466   :  { %v1413_v62 = vpop.f32.mrf.mxu1 }
 0x467   :  { %v699_v46 = vadd.f32 %v1413_v62, %v619_v45 }
 0x468   :  { %v700_v1 = vpop.f32.mrf.mxu1 }
 0x469   :  { %v701_v2 = vadd.f32 %v700_v1, %v623_v63 }
 0x46b   :  { %1095 = vmatprep.subr.mxu0 %v701_v2 }
 0x46c   :  { %1096 = vmatpush3.msra.mxu0 %v701_v2  ;;  %v808_v2 = vld [vmem:[#allocation5 + $0x38] sm:$0xff] }
 0x46d   :  { %1097 = vmatprep.subr.mxu0 %v695_v3 }
 0x46e   :  { %1098 = vmatpush3.msra.mxu0 %v695_v3  ;;  %v935_v3 = vld [vmem:[#allocation8 + $0x30] sm:$0xff] }
 0x46f   :  { %1100 = vmatmul.mubr.msk.f32.vlgmr.msra.gmra.mxu0 %vm245_vm0, %v705_v4  ;;  %857 = vmatprep.subr.mxu0 %v843_v5  ;;  %v1062_v4 = vld [vmem:[%s1441_s4 + $0x6] sm:$0x3]  ;;  %s1282_s4 = smov [#allocation13]  }
 0x470   :  { %858 = vmatpush1.msra.mxu0 %v842_v6  ;;  %921 = vmatprep.mubr.f32.mxu0 %v1281_v0  ;;  %v854_v6 = vrot.slane %v1062_v4, %v1375_v47  ;;  %s1039_s5 = sshll.u32 %s1282_s4, 4  ;;  %s1040_s5 = int_to_ptr.vmem [resolvable:$true] %s1039_s5 }
 0x471   :  { %859 = vmatprep.subr.mxu0 %v841_v7  ;;  %1106 = vmatprep.mubr.msk.f32.mxu1 %vm245_vm0, %v935_v3  ;;  %s1241_s23 = scalar_lea.vmem %s1040_s5, 256  ;;  %p1246_p3 = scmp.lt.s32.totalorder %s1040_s5, %s1040_s5 }
 0x472   :  { %860 = vmatpush1.msra.mxu0 %v840_v8  ;;  %p1242_p2 = scmp.ne.s32.totalorder %s1040_s5, %s1241_s23  ;;  %p1247_p4 = scmp.lt.s32.totalorder %s1241_s23, %s1241_s23 }
 0x473   :  { %861 = vmatprep.subr.mxu0 %v839_v9 }
 0x474   :  { %862 = vmatpush1.msra.mxu0 %v838_v10  ;;  %v1020_v10 = vld [vmem:[#allocation10 + $0x38] sm:$0xff]  ;;  %p1248_p5 = por %p1247_p4, %p1246_p3 }
 0x475   :  { %863 = vmatprep.subr.mxu0 %v837_v11 }
 0x476   :  { %864 = vmatpush1.msra.mxu0 %v836_v12  ;;  %v1025_v12 = vld [vmem:[#allocation11 + $0x38] sm:$0xff]  ;;  %p1249_p6 = pnand %p1248_p5, %p1242_p2 }
 0x477   :  { %865 = vmatprep.subr.mxu0 %v835_v13  ;;  %v1019_v13 = vld [vmem:[#allocation10 + $0x30] sm:$0xff] }
 0x478   :  { %866 = vmatpush1.msra.mxu0 %v834_v14 }
 0x479   :  { %867 = vmatprep.subr.mxu0 %v833_v15 }
 0x47a   :  { %868 = vmatpush1.msra.mxu0 %v832_v16  ;;  %v1024_v16 = vld [vmem:[#allocation11 + $0x30] sm:$0xff] }
 0x47b   :  { %869 = vmatprep.subr.mxu0 %v831_v17  ;;  %v850_v17 = vrot.slane %v1062_v4, %v1389_v26 }
 0x47c   :  { %870 = vmatpush1.msra.mxu0 %v830_v18 }
 0x47d   :  { %871 = vmatprep.subr.mxu0 %v829_v19 }
 0x47e   :  { %872 = vmatpush1.msra.mxu0 %v828_v20 }
 0x47f   :  { %873 = vmatprep.subr.mxu0 %v827_v21 }
 0x480   :  { %874 = vmatpush1.msra.mxu0 %v826_v22 }
 0x481   :  { %875 = vmatprep.subr.mxu0 %v825_v23 }
 0x482   :  { %876 = vmatpush1.msra.mxu0 %v824_v24 }
 0x483   :  { %877 = vmatprep.subr.mxu0 %v823_v25 }
 0x484   :  { %878 = vmatpush1.msra.mxu0 %v822_v27 }
 0x485   :  { %879 = vmatprep.subr.mxu0 %v821_v28 }
 0x486   :  { %880 = vmatpush1.msra.mxu0 %v820_v29 }
 0x487   :  { %881 = vmatprep.subr.mxu0 %v819_v30 }
 0x488   :  { %882 = vmatpush1.msra.mxu0 %v818_v31 }
 0x489   :  { %883 = vmatprep.subr.mxu0 %v817_v32 }
 0x48a   :  { %884 = vmatpush1.msra.mxu0 %v816_v33 }
 0x48b   :  { %885 = vmatprep.subr.mxu0 %v815_v34 }
 0x48c   :  { %886 = vmatpush1.msra.mxu0 %v814_v35 }
 0x48d   :  { %887 = vmatprep.subr.mxu0 %v813_v36 }
 0x48e   :  { %888 = vmatpush1.msra.mxu0 %v812_v37 }
 0x52f   :  { %v1101_v39 = vpop.f32.mrf.mxu0 }
 0x530   :  { %v791_v42 = vmul.f32 %v1101_v39, %v789_v38 }
 0x531   :  { %v778_v43 = vpop.f32.mrf.mxu0 }
 0x532   :  { %v796_v48 = vadd.f32 %v794_v40, %v791_v42  ;;  %v790_v51 = vmul.f32 %v788_v41, %v778_v43 }
 0x534   :  { %v798_v52 = vmax.f32 %v796_v48, 0.0  ;;  %v795_v53 = vadd.f32 %v793_v44, %v790_v51 }
 0x536   :  { %v797_v50 = vmax.f32 %v795_v53, 0.0  ;;  %v800_v55 = vadd.f32 %v798_v52, %v699_v46 }
 0x538   :  { %v799_v56 = vadd.f32 %v797_v50, %v693_v49  ;;  %v805_v1 = vmul.f32 %v803_v58, %v800_v55 }
 0x53a   :  { %v804_v60 = vmul.f32 %v802_v54, %v799_v56  ;;  %v810_v61 = vadd.f32 %v808_v2, %v805_v1 }
 0x53c   :  { %v809_v63 = vadd.f32 %v807_v57, %v804_v60 }
 0x53e   :  { %922 = vmatmul.mubr.f32.vlgmr.msra.gmra.mxu0 %v809_v63 }
 0x53f   :  { %927 = vmatprep.mubr.f32.mxu0 %v1281_v0  ;;  %v936_v0 = vld [vmem:[#allocation8 + $0x38] sm:$0xff] }
 0x542   :  { %928 = vmatmul.mubr.f32.gmra.mxu0 %v810_v61 }
 0x5fe   :  { %v923_v59 = vpop.f32.mrf.mxu0 }
 0x5ff   :  { %v924_v22 = vadd.f32 %v923_v59, %v850_v17 }
 0x600   :  { %v925_v62 = vpop.f32.mrf.mxu0 }
 0x601   :  { %v926_v9 = vadd.f32 %v925_v62, %v854_v6 }
 0x602   :  { %v929_v5 = vpop.f32.mrf.mxu0 }
 0x603   :  { %v930_v19 = vadd.f32 %v929_v5, %v850_v17 }
 0x604   :  { %v931_v7 = vpop.f32.mrf.mxu0 }
 0x605   :  { %v932_v8 = vadd.f32 %v931_v7, %v854_v6 }
 0x607   :  { %1102 = vmatprep.subr.mxu1 %v932_v8 }
 0x608   :  { %1103 = vmatpush3.msra.mxu1 %v932_v8 }
 0x609   :  { %1104 = vmatprep.subr.mxu1 %v926_v9 }
 0x60a   :  { %1105 = vmatpush3.msra.mxu1 %v926_v9 }
 0x60b   :  { %1107 = vmatmul.mubr.msk.f32.vlgmr.msra.gmra.mxu1 %vm245_vm0, %v936_v0 }
 0x6cb   :  { %v1108_v11 = vpop.f32.mrf.mxu1 }
 0x6cc   :  { %v1022_v14 = vmul.f32 %v1108_v11, %v1020_v10 }
 0x6cd   :  { %v1009_v15 = vpop.f32.mrf.mxu1 }
 0x6ce   :  { %v1027_v47 = vadd.f32 %v1025_v12, %v1022_v14  ;;  %v1021_v18 = vmul.f32 %v1019_v13, %v1009_v15 }
 0x6d0   :  { %v1029_v20 = vmax.f32 %v1027_v47, 0.0  ;;  %v1026_v21 = vadd.f32 %v1024_v16, %v1021_v18 }
 0x6d2   :  { %v1031_v23 = vadd.f32 %v1029_v20, %v930_v19  ;;  %v1028_v24 = vmax.f32 %v1026_v21, 0.0 }
 0x6d4   :  { %1033 = vst [vmem:[#allocation13 + $0x8] sm:$0xff] %v1031_v23  ;;  %v1030_v25 = vadd.f32 %v1028_v24, %v924_v22 }
 0x6d6   :  { %1032 = vst [vmem:[#allocation13] sm:$0xff] %v1030_v25 }
 0x6d7   :  { %1252 = shalt.err (!%p1249_p6)
}
 0x6d8   :  { %1045 = dma.vmem_to_hbm [thread:$0]  %s1040_s5, 256, %s1445_s8, [#allocation4], %s1273_s10, %s1273_s10, %s1274_s11  }
 0x6d9   :  { %1269 = dma.done.wait [#allocation4], 256  }
 0x6da   :  { %1270 = vsyncadd [#allocation4], 4294967040 }
 0x6db   :  { %1049 = vsyncpa [#allocation3], 1 }
 0x6dc   :  { %1050 = vsyncpa [#allocation6], 1 }
 0x6dd   :  { %1051 = vsyncpa [#allocation9], 1 }
 0x6de   :  { %1052 = vsyncpa [#allocation12], 1 }
 0x6df   :  { %1053 = vsyncpa [#allocation4], 1 }

</bundles_post_ra>
